<compile_context>
chip_gen: v7x
topology: tpu7x:2x2x1
jax: 0.10.0
libtpu: 0.0.40
codegen_flags: <defaults>
</compile_context>

<pallas_src>
import functools

import jax
import jax.numpy as jnp
from jax.experimental import pallas as pl
from jax.experimental.pallas import tpu as pltpu

NEG_SLOPE = 0.01            # nn.LeakyReLU default negative_slope
_LANE = 128                 # lane width: batch-tile granularity
_SUB = 8                    # f32 sublane granularity: feature-dim padding for transposes
_STEP_OVERHEAD_GROUPS = 16  # ~0.35us fixed per-grid-step cost, in units of 128-row groups


def _round_up(v, m):
    return -(-v // m) * m


def _leaky(z):
    return jnp.where(z >= 0, z, NEG_SLOPE * z)


def _choose_batch_tiling(batch, cap):
    """Pick (block_batch, n_blocks): block is a multiple of 128, >=2 blocks whenever the
    padded batch allows it (v7x dual-TensorCore sharding + pipeline overlap), padding is
    kept minimal, and a simple cost model trades per-step overhead vs padded waste."""
    n128 = max(1, -(-batch // _LANE))          # 128-row groups after padding to 128
    cap_g = max(1, cap // _LANE)
    max_g = min(cap_g, n128)
    if n128 >= 2:
        max_g = max(1, min(max_g, n128 // 2))  # guarantee at least 2 grid blocks
    best_g, best_cost = 1, None
    for g in range(1, max_g + 1):
        nb = -(-n128 // g)
        # (data + padding waste) groups moved + fixed per-step overhead per block
        cost = nb * (g + _STEP_OVERHEAD_GROUPS)
        if best_cost is None or cost < best_cost:
            best_g, best_cost = g, cost
    n_blocks = -(-n128 // best_g)
    return best_g * _LANE, n_blocks


def _autoencoder_kernel(n_enc_hidden, n_dec_hidden, *refs):
    # refs = (x_ref, y_ref, *param_refs, recon_ref, mean_ref)
    # Activations are kept TRANSPOSED (features, batch_block) inside the kernel so every
    # store is lane-dense. Weights are in PyTorch nn.Linear layout (out, in), biases
    # (out, 1), so every layer is:  a_out = W @ a_in + b.
    x_ref, y_ref = refs[0], refs[1]
    recon_ref, mean_ref = refs[-2], refs[-1]
    p = refs[2:-2]

    # One in-kernel transpose of each input block (XLU; hides under the input DMA).
    a = x_ref[...].T      # (d_in_p, Bb)
    yT = y_ref[...].T     # (n_dom_p, Bb)

    idx = 0

    # ---- Encoder hidden layers: Linear + LeakyReLU ----
    for _ in range(n_enc_hidden):
        w, b = p[idx][...], p[idx + 1][...]
        idx += 2
        a = _leaky(jnp.dot(w, a, preferred_element_type=jnp.float32) + b)

    # ---- Encoder mean head (model_mode='ae': latent = mean = logvar) ----
    wm, bm = p[idx][...], p[idx + 1][...]
    idx += 2
    mean = jnp.dot(wm, a, preferred_element_type=jnp.float32) + bm
    mean_ref[...] = mean.astype(mean_ref.dtype)

    # ---- Decoder. First linear consumes concat([latent, y]); the concat is folded into
    # a split matmul with HOST-split weight halves (no lane-unaligned slice here). ----
    wz, wy, bd = p[idx][...], p[idx + 1][...], p[idx + 2][...]
    idx += 3
    z = (jnp.dot(wz, mean, preferred_element_type=jnp.float32)
         + jnp.dot(wy, yT, preferred_element_type=jnp.float32)
         + bd)
    for _ in range(n_dec_hidden):
        z = _leaky(z)
        w, b = p[idx][...], p[idx + 1][...]
        idx += 2
        z = jnp.dot(w, z, preferred_element_type=jnp.float32) + b
    recon_ref[...] = z.astype(recon_ref.dtype)  # Decoder.forward returns logits (no sigmoid)


def autoencoder_forward(x, y, enc_layers, mean_layer, dec_layers, logits_layer,
                        *, block_batch=None, block_batch_cap=4096):
    """Fused Autoencoder forward.

    x: (B, d_in) float32 data, y: (B, n_domains) float32 conditioning (one-hot).
    *_layers: (W, b) with W in PyTorch layout (out_features, in_features), b (out,).
    Returns (x_recon, latent, mean, logvar) with latent == mean == logvar ('ae' mode).
    """
    B, d_in = x.shape
    n_dom = y.shape[1]
    d_lat = mean_layer[0].shape[0]
    d_out = logits_layer[0].shape[0]

    # ---- batch tiling: pad to a multiple of 128, >=2 blocks when possible, large cap ----
    if block_batch is None:
        block_batch, n_blocks = _choose_batch_tiling(B, block_batch_cap)
    else:
        # robustness: a caller-provided block must satisfy the 128-lane rule
        block_batch = max(_LANE, _round_up(block_batch, _LANE))
        n_blocks = -(-B // block_batch)
    B_pad = n_blocks * block_batch

    # ---- feature padding (multiple of 8) so the in-kernel transposes are tile-friendly;
    # matching zero weight columns keep the math exact. ----
    d_in_p = _round_up(d_in, _SUB)
    n_dom_p = _round_up(n_dom, _SUB)
    x = jnp.pad(x, ((0, B_pad - B), (0, d_in_p - d_in)))
    y = jnp.pad(y, ((0, B_pad - B), (0, n_dom_p - n_dom)))

    # ---- assemble VMEM-resident parameters (constant index_maps -> DMA'd once) ----
    params = []
    enc_list = list(enc_layers)
    if enc_list:
        w0e, b0e = enc_list[0]
        params += [jnp.pad(w0e, ((0, 0), (0, d_in_p - d_in))), b0e.reshape(-1, 1)]
        for w, b in enc_list[1:]:
            params += [w, b.reshape(-1, 1)]
        params += [mean_layer[0], mean_layer[1].reshape(-1, 1)]
    else:
        params += [jnp.pad(mean_layer[0], ((0, 0), (0, d_in_p - d_in))),
                   mean_layer[1].reshape(-1, 1)]

    dec_all = list(dec_layers) + [logits_layer]
    w0d, b0d = dec_all[0]
    params += [w0d[:, :d_lat],                                        # latent half
               jnp.pad(w0d[:, d_lat:], ((0, 0), (0, n_dom_p - n_dom))),  # conditional half
               b0d.reshape(-1, 1)]
    for w, b in dec_all[1:]:
        params += [w, b.reshape(-1, 1)]

    in_specs = [pl.BlockSpec((block_batch, d_in_p), lambda j: (j, 0)),
                pl.BlockSpec((block_batch, n_dom_p), lambda j: (j, 0))]
    for prm in params:
        in_specs.append(pl.BlockSpec(prm.shape, lambda j: (0, 0)))

    # Lane-dense transposed outputs: (features, batch) with >=128-wide last dim.
    out_shape = (jax.ShapeDtypeStruct((d_out, B_pad), x.dtype),
                 jax.ShapeDtypeStruct((d_lat, B_pad), x.dtype))
    out_specs = (pl.BlockSpec((d_out, block_batch), lambda j: (0, j)),
                 pl.BlockSpec((d_lat, block_batch), lambda j: (0, j)))

    # Scoped-VMEM guard only if a caller forces a huge block (v5e default is 16 MiB);
    # the default cap (4096 rows) stays far below it.
    io_bytes_per_block = 4 * block_batch * (d_in_p + n_dom_p + d_out + d_lat)
    compiler_kwargs = dict(dimension_semantics=("parallel",))
    if 2 * io_bytes_per_block > (12 << 20):
        compiler_kwargs["vmem_limit_bytes"] = min(2 * io_bytes_per_block + (8 << 20),
                                                  100 << 20)

    kernel = functools.partial(_autoencoder_kernel, len(enc_list), len(dec_layers))
    reconT, meanT = pl.pallas_call(
        kernel,
        out_shape=out_shape,
        grid=(n_blocks,),
        in_specs=in_specs,
        out_specs=out_specs,
        compiler_params=pltpu.CompilerParams(**compiler_kwargs),
    )(x, y, *params)

    # Slice padded batch lanes off BEFORE transposing so padded rows are never copied.
    recon = reconT[:, :B].T
    mean = meanT[:, :B].T
    latent = mean   # model_mode='ae', normalize=False -> latent = mean
    logvar = mean   # logvar = mean when not in VAE mode
    return recon, latent, mean, logvar


if __name__ == "__main__":
    # Options matching the PyTorch Autoencoder spec for the MLP (non-conv) path.
    options = {
        "dims": [32, 16, 8],        # encoder dims; decoder reverses and adds n_domains
        "n_domains": 2,
        "convolution": False,
        "conditional": True,        # latent concatenated with domain one-hot y
        "model_mode": "ae",         # no VAE sampling -> latent = mean, logvar = mean
        "normalize": False,
        "isBatchNorm": False,
        "isDropout": False,
        "dropout_rate": 0.2,
    }

    dims = options["dims"]
    n_dom = options["n_domains"]
    dec_dims = dims[::-1]
    dec_dims[0] += n_dom            # -> [10, 16, 32]

    key = jax.random.PRNGKey(0)

    def linear_init(k, d_in, d_out):
        wk, bk = jax.random.split(k)
        bound = 1.0 / (d_in ** 0.5)
        w = jax.random.uniform(wk, (d_out, d_in), jnp.float32, -bound, bound)
        b = jax.random.uniform(bk, (d_out,), jnp.float32, -bound, bound)
        return w, b

    # Encoder hidden: Linear(32->16)+LeakyReLU; mean head: Linear(16->8)
    enc_layers = []
    for i in range(1, len(dims) - 1):
        key, sub = jax.random.split(key)
        enc_layers.append(linear_init(sub, dims[i - 1], dims[i]))
    key, sub = jax.random.split(key)
    mean_layer = linear_init(sub, dims[-2], dims[-1])

    # Decoder hidden: Linear(10->16)+LeakyReLU; logits: Linear(16->32)
    dec_layers = []
    for i in range(1, len(dec_dims) - 1):
        key, sub = jax.random.split(key)
        dec_layers.append(linear_init(sub, dec_dims[i - 1], dec_dims[i]))
    key, sub = jax.random.split(key)
    logits_layer = linear_init(sub, dec_dims[-2], dec_dims[-1])

    # Inputs: x (B, 32) data, y (B, 2) domain one-hot. B=300 is not a multiple of 128 so
    # the minimal-padding path (384 rows, 3 blocks of 128 -> >=2 blocks for v7x) runs.
    B = 300
    key, xk, yk = jax.random.split(key, 3)
    x = jax.random.normal(xk, (B, dims[0]), dtype=jnp.float32)
    dom = jax.random.randint(yk, (B,), 0, n_dom)
    y = jax.nn.one_hot(dom, n_dom, dtype=jnp.float32)

    recon, latent, mean, logvar = autoencoder_forward(
        x, y, enc_layers, mean_layer, dec_layers, logits_layer)
    recon, latent, mean, logvar = jax.block_until_ready((recon, latent, mean, logvar))

    # ---- pure-JAX reference (same semantics as the PyTorch module) ----
    a = x
    for w, b in enc_layers:
        a = _leaky(a @ w.T + b)
    mean_ref = a @ mean_layer[0].T + mean_layer[1]
    latent_ref = mean_ref
    h = jnp.concatenate([latent_ref, y], axis=1)
    for w, b in dec_layers:
        h = _leaky(h @ w.T + b)
    recon_ref = h @ logits_layer[0].T + logits_layer[1]

    assert recon.shape == (B, dec_dims[-1]) and mean.shape == (B, dims[-1])
    assert jnp.allclose(mean, mean_ref, atol=1e-4, rtol=1e-4), "mean mismatch"
    assert jnp.allclose(latent, latent_ref, atol=1e-4, rtol=1e-4), "latent mismatch"
    assert jnp.allclose(logvar, mean_ref, atol=1e-4, rtol=1e-4), "logvar mismatch"
    assert jnp.allclose(recon, recon_ref, atol=1e-4, rtol=1e-4), "recon mismatch"
    print("KERNEL_OK")
</pallas_src>

<mosaic_0001>
module attributes {stable_mosaic.version = 11 : i64} {
  func.func @_autoencoder_kernel(%arg0: i32, %arg1: memref<128x32xf32, #tpu.memory_space<vmem>>, %arg2: memref<128x8xf32, #tpu.memory_space<vmem>>, %arg3: memref<16x32xf32, #tpu.memory_space<vmem>>, %arg4: memref<16x1xf32, #tpu.memory_space<vmem>>, %arg5: memref<8x16xf32, #tpu.memory_space<vmem>>, %arg6: memref<8x1xf32, #tpu.memory_space<vmem>>, %arg7: memref<16x8xf32, #tpu.memory_space<vmem>>, %arg8: memref<16x8xf32, #tpu.memory_space<vmem>>, %arg9: memref<16x1xf32, #tpu.memory_space<vmem>>, %arg10: memref<32x16xf32, #tpu.memory_space<vmem>>, %arg11: memref<32x1xf32, #tpu.memory_space<vmem>>, %arg12: memref<32x128xf32, #tpu.memory_space<vmem>>, %arg13: memref<8x128xf32, #tpu.memory_space<vmem>>) attributes {dimension_semantics = [#tpu.dimension_semantics<parallel>], iteration_bounds = array<i64: 3>, scalar_prefetch = 0 : i64, scratch_operands = 0 : i64, tpu.core_type = #tpu.core_type<tc>, window_params = [{transform_indices = @transform_0, window_bounds = array<i64: 128, 32>}, {transform_indices = @transform_1, window_bounds = array<i64: 128, 8>}, {pipeline_mode = #tpu.pipeline_mode<synchronous>, transform_indices = @transform_2, window_bounds = array<i64: 16, 32>}, {pipeline_mode = #tpu.pipeline_mode<synchronous>, transform_indices = @transform_3, window_bounds = array<i64: 16, 1>}, {pipeline_mode = #tpu.pipeline_mode<synchronous>, transform_indices = @transform_4, window_bounds = array<i64: 8, 16>}, {pipeline_mode = #tpu.pipeline_mode<synchronous>, transform_indices = @transform_5, window_bounds = array<i64: 8, 1>}, {pipeline_mode = #tpu.pipeline_mode<synchronous>, transform_indices = @transform_6, window_bounds = array<i64: 16, 8>}, {pipeline_mode = #tpu.pipeline_mode<synchronous>, transform_indices = @transform_7, window_bounds = array<i64: 16, 8>}, {pipeline_mode = #tpu.pipeline_mode<synchronous>, transform_indices = @transform_8, window_bounds = array<i64: 16, 1>}, {pipeline_mode = #tpu.pipeline_mode<synchronous>, transform_indices = @transform_9, window_bounds = array<i64: 32, 16>}, {pipeline_mode = #tpu.pipeline_mode<synchronous>, transform_indices = @transform_10, window_bounds = array<i64: 32, 1>}, {transform_indices = @transform_11, window_bounds = array<i64: 32, 128>}, {transform_indices = @transform_12, window_bounds = array<i64: 8, 128>}]} {
    %c0 = arith.constant 0 : index
    %c0_0 = arith.constant 0 : index
    %0 = vector.load %arg1[%c0, %c0_0] : memref<128x32xf32, #tpu.memory_space<vmem>>, vector<128x32xf32>
    %1 = tpu.transpose %0, [1, 0] : vector<128x32xf32> -> vector<32x128xf32>
    %c0_1 = arith.constant 0 : index
    %c0_2 = arith.constant 0 : index
    %2 = vector.load %arg2[%c0_1, %c0_2] : memref<128x8xf32, #tpu.memory_space<vmem>>, vector<128x8xf32>
    %3 = tpu.transpose %2, [1, 0] : vector<128x8xf32> -> vector<8x128xf32>
    %c0_3 = arith.constant 0 : index
    %c0_4 = arith.constant 0 : index
    %4 = vector.load %arg3[%c0_3, %c0_4] : memref<16x32xf32, #tpu.memory_space<vmem>>, vector<16x32xf32>
    %c0_5 = arith.constant 0 : index
    %c0_6 = arith.constant 0 : index
    %5 = vector.load %arg4[%c0_5, %c0_6] : memref<16x1xf32, #tpu.memory_space<vmem>>, vector<16x1xf32>
    %cst = arith.constant dense<0.000000e+00> : vector<16x128xf32>
    %6 = tpu.matmul %4, %1, %cst {dimension_numbers = #tpu.dot_dimension_numbers<[1], [0], [0], [1], [0, 0, 1, 1], [], []>} : vector<16x32xf32>, vector<32x128xf32>, vector<16x128xf32> -> vector<16x128xf32>
    %7 = vector.broadcast %5 : vector<16x1xf32> to vector<16x128xf32>
    %8 = arith.addf %6, %7 : vector<16x128xf32>
    %cst_7 = arith.constant 0.000000e+00 : f32
    %9 = vector.broadcast %cst_7 : f32 to vector<16x128xf32>
    %10 = arith.cmpf oge, %8, %9 : vector<16x128xf32>
    %cst_8 = arith.constant 0.00999999977 : f32
    %11 = vector.broadcast %cst_8 : f32 to vector<16x128xf32>
    %12 = arith.mulf %11, %8 : vector<16x128xf32>
    %13 = arith.select %10, %8, %12 : vector<16x128xi1>, vector<16x128xf32>
    %c0_9 = arith.constant 0 : index
    %c0_10 = arith.constant 0 : index
    %14 = vector.load %arg5[%c0_9, %c0_10] : memref<8x16xf32, #tpu.memory_space<vmem>>, vector<8x16xf32>
    %c0_11 = arith.constant 0 : index
    %c0_12 = arith.constant 0 : index
    %15 = vector.load %arg6[%c0_11, %c0_12] : memref<8x1xf32, #tpu.memory_space<vmem>>, vector<8x1xf32>
    %cst_13 = arith.constant dense<0.000000e+00> : vector<8x128xf32>
    %16 = tpu.matmul %14, %13, %cst_13 {dimension_numbers = #tpu.dot_dimension_numbers<[1], [0], [0], [1], [0, 0, 1, 1], [], []>} : vector<8x16xf32>, vector<16x128xf32>, vector<8x128xf32> -> vector<8x128xf32>
    %17 = vector.broadcast %15 : vector<8x1xf32> to vector<8x128xf32>
    %18 = arith.addf %16, %17 : vector<8x128xf32>
    %c0_14 = arith.constant 0 : index
    %c0_15 = arith.constant 0 : index
    %19 = vector.load %arg13[%c0_14, %c0_15] : memref<8x128xf32, #tpu.memory_space<vmem>>, vector<8x128xf32>
    tpu.vector_store %arg13[%c0_14, %c0_15], %18 {strides = array<i32>} : memref<8x128xf32, #tpu.memory_space<vmem>>, vector<8x128xf32>,
    %c0_16 = arith.constant 0 : index
    %c0_17 = arith.constant 0 : index
    %20 = vector.load %arg7[%c0_16, %c0_17] : memref<16x8xf32, #tpu.memory_space<vmem>>, vector<16x8xf32>
    %c0_18 = arith.constant 0 : index
    %c0_19 = arith.constant 0 : index
    %21 = vector.load %arg8[%c0_18, %c0_19] : memref<16x8xf32, #tpu.memory_space<vmem>>, vector<16x8xf32>
    %c0_20 = arith.constant 0 : index
    %c0_21 = arith.constant 0 : index
    %22 = vector.load %arg9[%c0_20, %c0_21] : memref<16x1xf32, #tpu.memory_space<vmem>>, vector<16x1xf32>
    %cst_22 = arith.constant dense<0.000000e+00> : vector<16x128xf32>
    %23 = tpu.matmul %20, %18, %cst_22 {dimension_numbers = #tpu.dot_dimension_numbers<[1], [0], [0], [1], [0, 0, 1, 1], [], []>} : vector<16x8xf32>, vector<8x128xf32>, vector<16x128xf32> -> vector<16x128xf32>
    %cst_23 = arith.constant dense<0.000000e+00> : vector<16x128xf32>
    %24 = tpu.matmul %21, %3, %cst_23 {dimension_numbers = #tpu.dot_dimension_numbers<[1], [0], [0], [1], [0, 0, 1, 1], [], []>} : vector<16x8xf32>, vector<8x128xf32>, vector<16x128xf32> -> vector<16x128xf32>
    %25 = arith.addf %23, %24 : vector<16x128xf32>
    %26 = vector.broadcast %22 : vector<16x1xf32> to vector<16x128xf32>
    %27 = arith.addf %25, %26 : vector<16x128xf32>
    %cst_24 = arith.constant 0.000000e+00 : f32
    %28 = vector.broadcast %cst_24 : f32 to vector<16x128xf32>
    %29 = arith.cmpf oge, %27, %28 : vector<16x128xf32>
    %cst_25 = arith.constant 0.00999999977 : f32
    %30 = vector.broadcast %cst_25 : f32 to vector<16x128xf32>
    %31 = arith.mulf %30, %27 : vector<16x128xf32>
    %32 = arith.select %29, %27, %31 : vector<16x128xi1>, vector<16x128xf32>
    %c0_26 = arith.constant 0 : index
    %c0_27 = arith.constant 0 : index
    %33 = vector.load %arg10[%c0_26, %c0_27] : memref<32x16xf32, #tpu.memory_space<vmem>>, vector<32x16xf32>
    %c0_28 = arith.constant 0 : index
    %c0_29 = arith.constant 0 : index
    %34 = vector.load %arg11[%c0_28, %c0_29] : memref<32x1xf32, #tpu.memory_space<vmem>>, vector<32x1xf32>
    %cst_30 = arith.constant dense<0.000000e+00> : vector<32x128xf32>
    %35 = tpu.matmul %33, %32, %cst_30 {dimension_numbers = #tpu.dot_dimension_numbers<[1], [0], [0], [1], [0, 0, 1, 1], [], []>} : vector<32x16xf32>, vector<16x128xf32>, vector<32x128xf32> -> vector<32x128xf32>
    %36 = vector.broadcast %34 : vector<32x1xf32> to vector<32x128xf32>
    %37 = arith.addf %35, %36 : vector<32x128xf32>
    %c0_31 = arith.constant 0 : index
    %c0_32 = arith.constant 0 : index
    %38 = vector.load %arg12[%c0_31, %c0_32] : memref<32x128xf32, #tpu.memory_space<vmem>>, vector<32x128xf32>
    tpu.vector_store %arg12[%c0_31, %c0_32], %37 {strides = array<i32>} : memref<32x128xf32, #tpu.memory_space<vmem>>, vector<32x128xf32>,
    return
  }
  func.func @transform_0(%arg0: i32) -> (i32, i32) {
    %c0_i32 = arith.constant 0 : i32
    %c0_i32_0 = arith.constant 0 : i32
    return %arg0, %c0_i32 : i32, i32
  }
  func.func @transform_1(%arg0: i32) -> (i32, i32) {
    %c0_i32 = arith.constant 0 : i32
    %c0_i32_0 = arith.constant 0 : i32
    return %arg0, %c0_i32 : i32, i32
  }
  func.func @transform_2(%arg0: i32) -> (i32, i32) {
    %c0_i32 = arith.constant 0 : i32
    %c0_i32_0 = arith.constant 0 : i32
    %c0_i32_1 = arith.constant 0 : i32
    return %c0_i32, %c0_i32_0 : i32, i32
  }
  func.func @transform_3(%arg0: i32) -> (i32, i32) {
    %c0_i32 = arith.constant 0 : i32
    %c0_i32_0 = arith.constant 0 : i32
    %c0_i32_1 = arith.constant 0 : i32
    return %c0_i32, %c0_i32_0 : i32, i32
  }
  func.func @transform_4(%arg0: i32) -> (i32, i32) {
    %c0_i32 = arith.constant 0 : i32
    %c0_i32_0 = arith.constant 0 : i32
    %c0_i32_1 = arith.constant 0 : i32
    return %c0_i32, %c0_i32_0 : i32, i32
  }
  func.func @transform_5(%arg0: i32) -> (i32, i32) {
    %c0_i32 = arith.constant 0 : i32
    %c0_i32_0 = arith.constant 0 : i32
    %c0_i32_1 = arith.constant 0 : i32
    return %c0_i32, %c0_i32_0 : i32, i32
  }
  func.func @transform_6(%arg0: i32) -> (i32, i32) {
    %c0_i32 = arith.constant 0 : i32
    %c0_i32_0 = arith.constant 0 : i32
    %c0_i32_1 = arith.constant 0 : i32
    return %c0_i32, %c0_i32_0 : i32, i32
  }
  func.func @transform_7(%arg0: i32) -> (i32, i32) {
    %c0_i32 = arith.constant 0 : i32
    %c0_i32_0 = arith.constant 0 : i32
    %c0_i32_1 = arith.constant 0 : i32
    return %c0_i32, %c0_i32_0 : i32, i32
  }
  func.func @transform_8(%arg0: i32) -> (i32, i32) {
    %c0_i32 = arith.constant 0 : i32
    %c0_i32_0 = arith.constant 0 : i32
    %c0_i32_1 = arith.constant 0 : i32
    return %c0_i32, %c0_i32_0 : i32, i32
  }
  func.func @transform_9(%arg0: i32) -> (i32, i32) {
    %c0_i32 = arith.constant 0 : i32
    %c0_i32_0 = arith.constant 0 : i32
    %c0_i32_1 = arith.constant 0 : i32
    return %c0_i32, %c0_i32_0 : i32, i32
  }
  func.func @transform_10(%arg0: i32) -> (i32, i32) {
    %c0_i32 = arith.constant 0 : i32
    %c0_i32_0 = arith.constant 0 : i32
    %c0_i32_1 = arith.constant 0 : i32
    return %c0_i32, %c0_i32_0 : i32, i32
  }
  func.func @transform_11(%arg0: i32) -> (i32, i32) {
    %c0_i32 = arith.constant 0 : i32
    %c0_i32_0 = arith.constant 0 : i32
    return %c0_i32, %arg0 : i32, i32
  }
  func.func @transform_12(%arg0: i32) -> (i32, i32) {
    %c0_i32 = arith.constant 0 : i32
    %c0_i32_0 = arith.constant 0 : i32
    return %c0_i32, %arg0 : i32, i32
  }
}

</mosaic_0001>

<bundles_post_ra>
// kernel: tpu_custom_call.1
= control target key start
LH: loop header
LB: loop body
LE: loop exit
PB: predicated region body
PF: predicated region fallthrough
CT: control target
= control target key end

     0   :  { %s2069_s0 = inlined_call_operand.vmem [shape: f32[384,32], index: 0, kind: input, shape index: {}]   ;;  %s2070_s1 = inlined_call_operand.vmem [shape: f32[384,8], index: 1, kind: input, shape index: {}]   ;;  %s2071_s2 = inlined_call_operand.vmem [shape: f32[16,32], index: 2, kind: input, shape index: {}]   ;;  %s2072_s3 = inlined_call_operand.vmem [shape: f32[16,1], index: 3, kind: input, shape index: {}]   ;;  %s2073_s4 = inlined_call_operand.vmem [shape: f32[8,16], index: 4, kind: input, shape index: {}]   ;;  %s2074_s5 = inlined_call_operand.vmem [shape: f32[8,1], index: 5, kind: input, shape index: {}]   ;;  %s2075_s6 = inlined_call_operand.vmem [shape: f32[16,8], index: 6, kind: input, shape index: {}]   ;;  %s2076_s7 = inlined_call_operand.vmem [shape: f32[16,8], index: 7, kind: input, shape index: {}]   ;;  %s2077_s8 = inlined_call_operand.vmem [shape: f32[16,1], index: 8, kind: input, shape index: {}]   ;;  %s2078_s9 = inlined_call_operand.vmem [shape: f32[32,16], index: 9, kind: input, shape index: {}]   ;;  %s2079_s10 = inlined_call_operand.vmem [shape: f32[32,1], index: 10, kind: input, shape index: {}]   ;;  %s2080_s11 = inlined_call_operand.hbm [shape: f32[32,384], index: 11, kind: output, shape index: {0}]   ;;  %s2081_s12 = inlined_call_operand.hbm [shape: f32[8,384], index: 12, kind: output, shape index: {1}]  }
   0x1   :  { %2084 = sst [smem:[#allocation8_spill]] %s2069_s0 }
   0x2   :  { %2085 = sst [smem:[#allocation9_spill]] %s2070_s1 }
   0x3   :  { %2086 = sst [smem:[#allocation10_spill]] %s2071_s2 }
   0x4   :  { %18 = vsyncpa [#allocation3], 0 }
   0x5   :  { %20 = vsyncpa [#allocation3 + $0x1], 0 }
   0x6   :  { %21 = vsyncpa [#allocation5], 0 }
   0x7   :  { %23 = vsyncpa [#allocation5 + $0x1], 0  ;;  %s1739_s21 = smov 0   ;;  %s1741_s22 = smov 0  }
   0x8   :  { %s1743_s23 = smov 0   ;;  %s1745_s24 = smov 0  }
   0x9 LB: > { %s1760_s25 = sadd.s32 4294967295, %s1663_s24   ;;  %s1212_s26 = sadd.s32 4294967294, %s1663_s24   ;;  %s1663_s24 = sphi %s1745_s24, %s2101_s24   ;;  %s1659_s23 = sphi %s1743_s23, %s2100_s23   ;;  %s1655_s22 = sphi %s1741_s22, %s2099_s22   ;;  %s1651_s21 = sphi %s1739_s21, %s2098_s21  }
   0xa   : > { %s1764_s27 = sadd.s32 1, %s1663_s24   ;;  %s277_s28 = sadd.s32 1, %s1659_s23 }
   0xb   : > { %s274_s29 = ssub.s32 %s1663_s24, %s1764_s27  ;;  %p287_p0 = scmp.ne.s32.totalorder %s1659_s23, %s1655_s22 }
   0xc   : > { %p275_p1 = scmp.eq.s32.totalorder %s274_s29, 0  ;;  %p288_p2 = scmp.eq.s32.totalorder %s1760_s25, 2 }
   0xd   : > { %p293_p3 = scmp.ne.s32.totalorder %s1655_s22, %s1651_s21  ;;  %p294_p4 = scmp.eq.s32.totalorder %s1212_s26, 2 }
   0xe   : > { %s1775_s30 = scalar_select %p275_p1, %s1659_s23, %s277_s28  }
   0xf   : > { %p1777_p5 = por %p288_p2, %p287_p0  ;;  %p1781_p6 = por %p294_p4, %p293_p3 }
  0x10   : > { %p1215_p7 = scmp.ge.s32.totalorder %s1663_s24, 1  ;;  %p383_p8 = scmp.lt.s32.totalorder %s1663_s24, 4 }
  0x12   : > { %p384_p9 = pnand %p1215_p7, %p383_p8 }
  0x13   : > { %s1218_s15 = sshll.u32 (!%p384_p9), %s1760_s25, 4  ;;  %vm493_vm0 = vcmask (!%p384_p9), 261120   ;;  %s2089_s2 = sld [smem:[#allocation10_spill]] (!%p384_p9)  ;;  %v481_v1 = vld [vmem:[%s2072_s3] sm:$0xff] (!%p384_p9)  ;;  %v1665_v2 = vmov (!%p384_p9), 0   ;;  %v482_v3 = vld [vmem:[%s2072_s3 + $0x8] sm:$0xff] (!%p384_p9) }
  0x14   : > { %387 = sbr.rel (%p384_p9) target bundleno = 995 (0x3e3), region = 64  ;;  %p436_p10 = scmp.lt.s32.totalorder (!%p384_p9), %s1218_s15, 47  ;;  %1567 = vset.pattern.permute.xlu0 (!%p384_p9), %v1665_v2  ;;  %1568 = vset.pattern.permute.xlu1 (!%p384_p9), %v1665_v2  ;;  %vm1810_vm1 = vmpackc.low (!%p384_p9), %vm493_vm0, %vm493_vm0  ;;  %v716_v5 = vld [vmem:[%s2077_s8 + $0x8] sm:$0xff] (!%p384_p9)  ;;  %v953_v15 = vld [vmem:[%s2079_s10 + $0x18] sm:$0xff] (!%p384_p9)  ;;  %v1666_v33 = vmov (!%p384_p9), 0.0|0.0   ;;  %vm1667_vm2 = vmmov (!%p384_p9), 0  }
  0x15   : > { %485 = vperm.xlu0 (!%p384_p9), %1567, %v481_v1   ;;  %s2090_s0 = sld [smem:[#allocation8_spill]] (!%p384_p9)  ;;  %v951_v12 = vld [vmem:[%s2079_s10 + $0x8] sm:$0xff] (!%p384_p9)  ;;  %1459 = vmatprep.subr.bf16.mxu1 (!%p384_p9), %v1666_v33  ;;  %v1668_v34 = vmov (!%p384_p9), 0.0   ;;  %v630_v35 = vld [vmem:[%s2074_s5] sm:$0xff] (!%p384_p9)  ;;  %v952_v38 = vld [vmem:[%s2079_s10 + $0x10] sm:$0xff] (!%p384_p9)  ;;  %s2094_s1 = sld [smem:[#allocation9_spill]] (!%p384_p9) }
  0x16   : > { %1358 = vmatprep.mubr.msk.f32.mxu1 (!%p384_p9), %vm1667_vm2, %v1668_v34  ;;  %633 = vperm.xlu1 (!%p384_p9), %1568, %v630_v35   ;;  %v715_v36 = vld [vmem:[%s2077_s8] sm:$0xff] (!%p384_p9)  ;;  %vm717_vm5 = vcmask (!%p384_p9), 64512   ;;  %vm636_vm7 = vcmask (!%p384_p9), 130048   ;;  %v948_v33 = vld [vmem:[%s2078_s9 + $0x10] sm:$0xff] (!%p384_p9)  ;;  %v949_v34 = vld [vmem:[%s2078_s9 + $0x18] sm:$0xff] (!%p384_p9) }
  0x17   : > { %v950_v37 = vld [vmem:[%s2079_s10] sm:$0xff] (!%p384_p9)  ;;  %vm1898_vm6 = vmpackc.low (!%p384_p9), %vm717_vm5, %vm717_vm5 }
  0x18   : > { %v629_v54 = vld [vmem:[%s2073_s4] sm:$0xff] (!%p384_p9) }
  0x19   : > { %v479_v0 = vld [vmem:[%s2089_s2] sm:$0xff] (!%p384_p9)  ;;  %490 = vperm.xlu0 (!%p384_p9), %1567, %v482_v3   ;;  %v480_v32 = vld [vmem:[%s2089_s2 + $0x8] sm:$0xff] (!%p384_p9) }
  0x1a   : > { %1351 = vmatprep.mubr.msk.f32.mxu0 (!%p384_p9), %vm493_vm0, %v479_v0  ;;  %930 = vperm.xlu1 (!%p384_p9), %1568, %v715_v36   ;;  %v713_v55 = vld [vmem:[%s2076_s7] sm:$0xff] (!%p384_p9) }
  0x1b   : > { %s2103_s15 = smov (!%p436_p10, %s1218_s15), 47 }
  0x1c   : > { %s2082_s28 = sshll.u32 %s2103_s15, 3 }
  0x1d   : > { %s1806_s17 = scalar_lea.vmem %s2090_s0, %s2082_s28  ;;  %935 = vperm.xlu0 %1567, %v716_v5   ;;  %s2093_s0 = sshll.u32 %s2103_s15, 3 }
  0x1e   : > { %v447_v6 = vld [vmem:[%s1806_s17] sm:$0xff]  ;;  %v448_v7 = vld [vmem:[%s1806_s17 + $0x8] sm:$0xff]  ;;  %v449_v8 = vld [vmem:[%s1806_s17 + $0x10] sm:$0xff]  ;;  %956 = vperm.xlu1 %1568, %v950_v37   ;;  %s1892_s2 = scalar_lea.vmem %s2094_s1, %s2093_s0  ;;  %s2083_s0 = sshll.u32 %s1760_s25, 7 }
  0x1f   : > { %v1411_v9 = vpack.c.bf16 %v448_v7, %v447_v6  ;;  %v450_v10 = vld [vmem:[%s1806_s17 + $0x18] sm:$0xff]  ;;  %v451_v13 = vld [vmem:[%s1806_s17 + $0x20] sm:$0xff]  ;;  %v452_v14 = vld [vmem:[%s1806_s17 + $0x28] sm:$0xff]  ;;  %s1998_s16 = scalar_lea.hbm %s2081_s12, %s2083_s0  ;;  %s1669_s1 = smov [#allocation4]  }
  0x20   : > { %v1417_v11 = vpack.c.bf16 %v450_v10, %v449_v8  ;;  %v1423_v16 = vpack.c.bf16 %v452_v14, %v451_v13  ;;  %v453_v17 = vld [vmem:[%s1806_s17 + $0x30] sm:$0xff]  ;;  %v454_v18 = vld [vmem:[%s1806_s17 + $0x38] sm:$0xff]  ;;  %v455_v20 = vld [vmem:[%s1806_s17 + $0x40] sm:$0xff] }
  0x21   : > { %1413 = vmatprep.subr.msk.bf16.mxu0 %vm1810_vm1, %v1411_v9  ;;  %961 = vperm.xlu0 %1567, %v951_v12   ;;  %v1429_v19 = vpack.c.bf16 %v454_v18, %v453_v17  ;;  %v456_v21 = vld [vmem:[%s1806_s17 + $0x48] sm:$0xff]  ;;  %v457_v23 = vld [vmem:[%s1806_s17 + $0x50] sm:$0xff]  ;;  %v458_v24 = vld [vmem:[%s1806_s17 + $0x58] sm:$0xff] }
  0x22   : > { %1416 = vmatpush3.bf16.xpose.msk.msra.mxu0 %vm1810_vm1, %v1411_v9  ;;  %v1435_v22 = vpack.c.bf16 %v456_v21, %v455_v20  ;;  %v1441_v25 = vpack.c.bf16 %v458_v24, %v457_v23  ;;  %v459_v26 = vld [vmem:[%s1806_s17 + $0x60] sm:$0xff]  ;;  %v460_v27 = vld [vmem:[%s1806_s17 + $0x68] sm:$0xff]  ;;  %v461_v29 = vld [vmem:[%s1806_s17 + $0x70] sm:$0xff]  ;;  %966 = vperm.xlu1 %1568, %v952_v38  }
  0x23   : > { %1419 = vmatprep.subr.msk.bf16.mxu0 %vm1810_vm1, %v1417_v11  ;;  %v1447_v28 = vpack.c.bf16 %v460_v27, %v459_v26  ;;  %v462_v30 = vld [vmem:[%s1806_s17 + $0x78] sm:$0xff]  ;;  %v463_v46 = vld [vmem:[%s1892_s2] sm:$0xff]  ;;  %v464_v47 = vld [vmem:[%s1892_s2 + $0x8] sm:$0xff] }
  0x24   : > { %v1453_v31 = vpack.c.bf16 %v462_v30, %v461_v29  ;;  %v1462_v51 = vpack.c.bf16 %v464_v47, %v463_v46  ;;  %v465_v56 = vld [vmem:[%s1892_s2 + $0x10] sm:$0xff]  ;;  %v466_v57 = vld [vmem:[%s1892_s2 + $0x18] sm:$0xff]  ;;  %v467_v59 = vld [vmem:[%s1892_s2 + $0x20] sm:$0xff] }
  0x25   : > { %971 = vperm.xlu0 %1567, %v953_v15   ;;  %v1468_v58 = vpack.c.bf16 %v466_v57, %v465_v56  ;;  %v468_v60 = vld [vmem:[%s1892_s2 + $0x28] sm:$0xff]  ;;  %v469_v62 = vld [vmem:[%s1892_s2 + $0x30] sm:$0xff]  ;;  %v470_v63 = vld [vmem:[%s1892_s2 + $0x38] sm:$0xff] }
  0x26   : > { %v1474_v61 = vpack.c.bf16 %v468_v60, %v467_v59  ;;  %v1480_v0 = vpack.c.bf16 %v470_v63, %v469_v62  ;;  %v471_v1 = vld [vmem:[%s1892_s2 + $0x40] sm:$0xff]  ;;  %v472_v2 = vld [vmem:[%s1892_s2 + $0x48] sm:$0xff]  ;;  %v473_v4 = vld [vmem:[%s1892_s2 + $0x50] sm:$0xff] }
  0x27   : > { %v1486_v3 = vpack.c.bf16 %v472_v2, %v471_v1  ;;  %v474_v5 = vld [vmem:[%s1892_s2 + $0x58] sm:$0xff]  ;;  %v475_v7 = vld [vmem:[%s1892_s2 + $0x60] sm:$0xff]  ;;  %v476_v8 = vld [vmem:[%s1892_s2 + $0x68] sm:$0xff] }
  0x28   : > { %v1492_v6 = vpack.c.bf16 %v474_v5, %v473_v4  ;;  %v1498_v9 = vpack.c.bf16 %v476_v8, %v475_v7  ;;  %v477_v10 = vld [vmem:[%s1892_s2 + $0x70] sm:$0xff]  ;;  %v714_v13 = vld [vmem:[%s2076_s7 + $0x8] sm:$0xff]  ;;  %v711_v14 = vld [vmem:[%s2075_s6] sm:$0xff] }
  0x29   : > { %v946_v20 = vld [vmem:[%s2078_s9] sm:$0xff] }
  0x2a   : > { %1422 = vmatpush3.bf16.xpose.msk.msra.mxu0 %vm1810_vm1, %v1417_v11  ;;  %v478_v11 = vld [vmem:[%s1892_s2 + $0x78] sm:$0xff]  ;;  %s1965_s2 = sand.u32 1, %s1655_s22  }
  0x2b   : > { %1425 = vmatprep.subr.msk.bf16.mxu0 %vm1810_vm1, %v1423_v16  ;;  %v1504_v12 = vpack.c.bf16 %v478_v11, %v477_v10  ;;  %s1217_s17 = sshll.u32 %s1965_s2, 3  ;;  %s1081_s18 = scalar_lea.sflag [#allocation5], %s1965_s2 }
  0x2c   : > { %s1971_s15 = scalar_lea.vmem [#allocation4], %s1217_s17  ;;  %s1573_s17 = sshll.u32 %s1669_s1, 4  ;;  %s1574_s17 = int_to_ptr.vmem [resolvable:$false] %s1573_s17 }
  0x2d   : > { %s1109_s28 = sshll.u32 %s1971_s15, 4  ;;  %s1575_s20 = scalar_lea.vmem %s1574_s17, 256  ;;  %s1110_s28 = int_to_ptr.vmem [resolvable:$true] %s1109_s28 }
  0x2e   : > { %s1569_s19 = scalar_lea.vmem %s1110_s28, 128  ;;  %p1576_p0 = scmp.lt.s32.totalorder %s1110_s28, %s1574_s17 }
  0x2f   : > { %p1570_p11 = scmp.ne.s32.totalorder %s1110_s28, %s1569_s19  ;;  %p1577_p1 = scmp.lt.s32.totalorder %s1575_s20, %s1569_s19 }
  0x31   : > { %p1571_p12 = pnand %p1570_p11, %p1777_p5  ;;  %p1578_p2 = por %p1577_p1, %p1576_p0 }
  0x32   : > { %1428 = vmatpush3.bf16.xpose.msk.msra.mxu0 %vm1810_vm1, %v1423_v16 }
  0x33   : > { %1431 = vmatprep.subr.msk.bf16.mxu0 %vm1810_vm1, %v1429_v19  ;;  %p1572_p13 = pneg %p1571_p12 }
  0x35   : > { %p1579_p3 = pnand %p1578_p2, %p1572_p13 }
  0x3a   : > { %1434 = vmatpush3.bf16.xpose.msk.msra.mxu0 %vm1810_vm1, %v1429_v19  ;;  %v712_v19 = vld [vmem:[%s2075_s6 + $0x8] sm:$0xff] }
  0x3b   : > { %1437 = vmatprep.subr.msk.bf16.mxu0 %vm1810_vm1, %v1435_v22 }
  0x42   : > { %1440 = vmatpush3.bf16.xpose.msk.msra.mxu0 %vm1810_vm1, %v1435_v22 }
  0x43   : > { %1443 = vmatprep.subr.msk.bf16.mxu0 %vm1810_vm1, %v1441_v25 }
  0x4a   : > { %1446 = vmatpush3.bf16.xpose.msk.msra.mxu0 %vm1810_vm1, %v1441_v25 }
  0x4b   : > { %1449 = vmatprep.subr.msk.bf16.mxu0 %vm1810_vm1, %v1447_v28 }
  0x52   : > { %1452 = vmatpush3.bf16.xpose.msk.msra.mxu0 %vm1810_vm1, %v1447_v28 }
  0x53   : > { %1455 = vmatprep.subr.msk.bf16.mxu0 %vm1810_vm1, %v1453_v31 }
  0x5a   : > { %1458 = vmatpush3.bf16.xpose.msk.msra.mxu0 %vm1810_vm1, %v1453_v31 }
  0x61   : > { %1352 = vmatmul.mubr.msk.f32.vlgmr.msra.gmra.mrb[0].mxu0 %vm493_vm0, %v480_v32  ;;  %v947_v32 = vld [vmem:[%s2078_s9 + $0x8] sm:$0xff] }
  0x62   : > { %1405 = vmatprep.mubr.msk.f32.mxu0 %vm636_vm7, %v946_v20 }
  0x94   : > { %v486_v39 = vpop.permute.xlu0 %485 }
  0x95   : > { %v634_v15 = vpop.permute.xlu1 %633 }
  0x98   : > { %v491_v40 = vpop.permute.xlu0 %490 }
  0x99   : > { %v931_v23 = vpop.permute.xlu1 %930 }
  0x9c   : > { %v936_v21 = vpop.permute.xlu0 %935 }
 0x134   : > { %v1353_v41 = vpop.f32.mrb[0].mxu0 }
 0x135   : > { %v620_v42 = vadd.f32 %v1353_v41, %v491_v40  ;;  %v614_v43 = vpop.f32.mrb[1].mxu0 }
 0x136   : > { %v615_v44 = vadd.f32 %v614_v43, %v486_v39 }
 0x137   : > { %v626_v45 = vmul.f32 0.01, %v620_v42  ;;  %vm624_vm3 = vcmp.ge.f32.partialorder %v620_v42, 0.0 }
 0x138   : > { %v625_v48 = vmul.f32 0.01, %v615_v44  ;;  %vm623_vm4 = vcmp.ge.f32.partialorder %v615_v44, 0.0 }
 0x139   : > { %v628_v49 = vsel %vm624_vm3, %v620_v42, %v626_v45 }
 0x13a   : > { %v627_v50 = vsel %vm623_vm4, %v615_v44, %v625_v48 }
 0x13b   : > { %v1460_v52 = vpack.c.bf16 %v628_v49, %v627_v50 }
 0x13d   : > { %1461 = vmatpush3.bf16.msra.mxu1 %v1460_v52 }
 0x13e   : > { %1464 = vmatprep.subr.msk.bf16.mxu1 %vm1898_vm6, %v1462_v51 }
 0x140   : > { %1359 = vmatmul.mubr.msk.f32.vlgmr.msra.gmra.mrb[0].mxu1 %vm636_vm7, %v629_v54 }
 0x141   : > { %1393 = vmatprep.mubr.msk.f32.mxu1 %vm717_vm5, %v713_v55 }
 0x146   : > { %1467 = vmatpush3.bf16.xpose.msk.msra.mxu1 %vm1898_vm6, %v1462_v51 }
 0x147   : > { %1470 = vmatprep.subr.msk.bf16.mxu1 %vm1898_vm6, %v1468_v58 }
 0x14e   : > { %1473 = vmatpush3.bf16.xpose.msk.msra.mxu1 %vm1898_vm6, %v1468_v58 }
 0x14f   : > { %1476 = vmatprep.subr.msk.bf16.mxu1 %vm1898_vm6, %v1474_v61 }
 0x156   : > { %1479 = vmatpush3.bf16.xpose.msk.msra.mxu1 %vm1898_vm6, %v1474_v61 }
 0x157   : > { %1482 = vmatprep.subr.msk.bf16.mxu1 %vm1898_vm6, %v1480_v0 }
 0x15e   : > { %1485 = vmatpush3.bf16.xpose.msk.msra.mxu1 %vm1898_vm6, %v1480_v0 }
 0x15f   : > { %1488 = vmatprep.subr.msk.bf16.mxu1 %vm1898_vm6, %v1486_v3 }
 0x166   : > { %1491 = vmatpush3.bf16.xpose.msk.msra.mxu1 %vm1898_vm6, %v1486_v3 }
 0x167   : > { %1494 = vmatprep.subr.msk.bf16.mxu1 %vm1898_vm6, %v1492_v6 }
 0x16e   : > { %1497 = vmatpush3.bf16.xpose.msk.msra.mxu1 %vm1898_vm6, %v1492_v6 }
 0x16f   : > { %1500 = vmatprep.subr.msk.bf16.mxu1 %vm1898_vm6, %v1498_v9 }
 0x176   : > { %1503 = vmatpush3.bf16.xpose.msk.msra.mxu1 %vm1898_vm6, %v1498_v9 }
 0x177   : > { %1506 = vmatprep.subr.msk.bf16.mxu1 %vm1898_vm6, %v1504_v12 }
 0x17e   : > { %1509 = vmatpush3.bf16.xpose.msk.msra.mxu1 %vm1898_vm6, %v1504_v12 }
 0x185   : > { %1394 = vmatmul.mubr.msk.f32.vlgmr.msra.gmra.mrb[2].mxu1 %vm717_vm5, %v714_v13 }
 0x186   : > { %1398 = vmatprep.mubr.msk.f32.mxu1 %vm717_vm5, %v711_v14 }
 0x213   : > { %v706_v16 = vpop.f32.mrb[0].mxu1 }
 0x214   : > { %v707_v17 = vadd.f32 %v706_v16, %v634_v15  ;;  %v1360_v18 = vpop.f32.mrb[1].mxu1 }
 0x216   : > { %1396 = vmatprep.subr.mxu1 %v707_v17  ;;  %710 = vst [vmem:[%s1971_s15] sm:$0xff] %v707_v17 }
 0x217   : > { %1397 = vmatpush3.msra.mxu1 %v707_v17 }
 0x218   : > { %1399 = vmatmul.mubr.msk.f32.vlgmr.msra.gmra.mrb[2].mxu1 %vm717_vm5, %v712_v19 }
 0x2eb   : > { %v1400_v22 = vpop.f32.mrb[2].mxu1 }
 0x2ec   : > { %v939_v24 = vadd.f32 %v1400_v22, %v936_v21  ;;  %v919_v25 = vpop.f32.mrb[3].mxu1 }
 0x2ed   : > { %v938_v26 = vadd.f32 %v931_v23, %v919_v25 }
 0x2ee   : > { %vm941_vm8 = vcmp.ge.f32.partialorder %v939_v24, 0.0  ;;  %v943_v27 = vmul.f32 0.01, %v939_v24 }
 0x2ef   : > { %vm940_vm9 = vcmp.ge.f32.partialorder %v938_v26, 0.0  ;;  %v942_v28 = vmul.f32 0.01, %v938_v26 }
 0x2f0   : > { %v945_v29 = vsel %vm941_vm8, %v939_v24, %v943_v27 }
 0x2f1   : > { %v944_v30 = vsel %vm940_vm9, %v938_v26, %v942_v28 }
 0x2f2   : > { %v1510_v31 = vpack.c.bf16 %v945_v29, %v944_v30 }
 0x2f4   : > { %1511 = vmatprep.subr.bf16.mxu0 %v1510_v31 }
 0x2f5   : > { %1513 = vmatpush3.bf16.msra.mxu0 %v1510_v31 }
 0x2f8   : > { %1406 = vmatmul.mubr.msk.f32.vlgmr.msra.gmra.mrb[2].mxu0 %vm636_vm7, %v947_v32 }
 0x2f9   : > { %1408 = vmatprep.mubr.msk.f32.mxu0 %vm636_vm7, %v948_v33 }
 0x2fc   : > { %1409 = vmatmul.mubr.msk.f32.gmra.mrb[4].mxu0 %vm636_vm7, %v949_v34 }
 0x2fd   : > { %1582 = shalt.err (!%p1579_p3)
}
 0x2fe   : > { %s1583_s15 = scalar_lea.hbm %s1998_s16, 128  ;;  %s1587_s1 = scalar_lea.hbm %s2081_s12, 384 }
 0x2ff   : > { %p1584_p4 = scmp.ne.s32.totalorder %s1998_s16, %s1583_s15  ;;  %p1588_p9 = scmp.lt.u32.totalorder %s1998_s16, %s2081_s12 }
 0x300   : > { %p1589_p10 = scmp.lt.u32.totalorder %s1587_s1, %s1583_s15  ;;  %p1591_p12 = scmp.lt.u32.totalorder %s1583_s15, %s1998_s16 }
 0x301   : > { %p1585_p7 = pnand %p1584_p4, %p1777_p5 }
 0x302   : > { %p1590_p11 = por %p1589_p10, %p1588_p9 }
 0x303   : > { %p1586_p8 = pneg %p1585_p7 }
 0x304   : > { %p1592_p13 = por %p1591_p12, %p1590_p11 }
 0x306   : > { %p1593_p0 = pnand %p1592_p13, %p1586_p8 }
 0x308   : > { %1596 = shalt.err (!%p1593_p0)
}
 0x309   : > { %1517 = dma.vmem_to_hbm [thread:$0]  (%p1777_p5), %s1110_s28, 128, %s1998_s16, %s1081_s18   ;;  %v962_v35 = vpop.permute.xlu0 %961  ;;  %v957_v36 = vpop.permute.xlu1 %956 }
 0x30a   : > { %s1216_s19 = sshll.u32 %s1965_s2, 5  ;;  %s2097_s28 = sshll.u32 %s1760_s25, 7 }
 0x30b   : > { %s427_s20 = scalar_lea.vmem [#allocation2], %s1216_s19  ;;  %s2026_s15 = scalar_lea.hbm %s2080_s11, %s2097_s28 }
 0x30c   : > { %s1093_s0 = sshll.u32 %s427_s20, 4  ;;  %s1076_s26 = scalar_lea.sflag [#allocation3], %s1965_s2  ;;  %s2019_s0 = int_to_ptr.vmem [resolvable:$true] %s1093_s0 }
 0x30d   : > { %v972_v41 = vpop.permute.xlu0 %971  ;;  %v967_v43 = vpop.permute.xlu1 %966  ;;  %s1597_s29 = scalar_lea.vmem %s2019_s0, 512  ;;  %s1670_s1 = smov [#allocation2]  }
 0x30e   : > { %p1598_p1 = scmp.ne.s32.totalorder %s2019_s0, %s1597_s29  ;;  %s1601_s17 = sshll.u32 %s1670_s1, 4  ;;  %s1602_s17 = int_to_ptr.vmem [resolvable:$false] %s1601_s17 }
 0x30f   : > { %s1603_s19 = scalar_lea.vmem %s1602_s17, 1024  ;;  %p1604_p4 = scmp.lt.s32.totalorder %s2019_s0, %s1602_s17 }
 0x310   : > { %p1599_p2 = pnand %p1598_p1, %p1777_p5  ;;  %p1605_p7 = scmp.lt.s32.totalorder %s1603_s19, %s1597_s29 }
 0x312   : > { %p1600_p3 = pneg %p1599_p2  ;;  %p1606_p8 = por %p1605_p7, %p1604_p4 }
 0x314   : > { %p1607_p9 = pnand %p1606_p8, %p1600_p3 }
 0x3cb   : > { %v1407_v37 = vpop.f32.mrb[2].mxu0 }
 0x3cc   : > { %v1058_v38 = vadd.f32 %v1407_v37, %v962_v35  ;;  %v1052_v39 = vpop.f32.mrb[3].mxu0 }
 0x3cd   : > { %v1053_v40 = vadd.f32 %v1052_v39, %v957_v36 }
 0x3ce   : > { %1072 = vst [vmem:[%s427_s20 + $0x8] sm:$0xff] %v1058_v38 }
 0x3cf   : > { %1071 = vst [vmem:[%s427_s20] sm:$0xff] %v1053_v40  ;;  %v1410_v42 = vpop.f32.mrb[4].mxu0 }
 0x3d0   : > { %v1068_v44 = vadd.f32 %v1410_v42, %v972_v41  ;;  %v1062_v45 = vpop.f32.mrb[5].mxu0 }
 0x3d1   : > { %v1063_v46 = vadd.f32 %v1062_v45, %v967_v43 }
 0x3d2   : > { %1074 = vst [vmem:[%s427_s20 + $0x18] sm:$0xff] %v1068_v44 }
 0x3d3   : > { %1073 = vst [vmem:[%s427_s20 + $0x10] sm:$0xff] %v1063_v46 }
 0x3d4   : > { %1610 = shalt.err (!%p1607_p9)
}
 0x3d5   : > { %s1611_s25 = scalar_lea.hbm %s2026_s15, 512  ;;  %s1615_s16 = scalar_lea.hbm %s2080_s11, 1536 }
 0x3d6   : > { %p1612_p10 = scmp.ne.s32.totalorder %s2026_s15, %s1611_s25  ;;  %p1616_p13 = scmp.lt.u32.totalorder %s2026_s15, %s2080_s11 }
 0x3d7   : > { %p1617_p0 = scmp.lt.u32.totalorder %s1615_s16, %s1611_s25  ;;  %p1619_p2 = scmp.lt.u32.totalorder %s1611_s25, %s2026_s15 }
 0x3d8   : > { %p1613_p11 = pnand %p1612_p10, %p1777_p5 }
 0x3d9   : > { %p1618_p1 = por %p1617_p0, %p1616_p13 }
 0x3da   : > { %p1614_p12 = pneg %p1613_p11 }
 0x3db   : > { %p1620_p3 = por %p1619_p2, %p1618_p1 }
 0x3dd   : > { %p1621_p4 = pnand %p1620_p3, %p1614_p12 }
 0x3df   : > { %1624 = shalt.err (!%p1621_p4)
}
 0x3e0   : > { %s1671_s29 = smov 128   ;;  %s1672_s17 = smov 384  }
 0x3e1   : > { %s1673_s19 = smov 8  }
 0x3e2   : > { %1516 = dma.vmem_to_hbm [thread:$0]  (%p1777_p5), %s2019_s0, 512, %s2026_s15, %s1076_s26, %s1671_s29, %s1672_s17, %s1673_s19  }
 0x3e3 PF: > { %p1527_p7 = scmp.ge.s32.totalorder %s1663_s24, 2  ;;  %s1121_s20 = sand.u32 1, %s1651_s21  }
 0x3e4   : > { %s1122_s25 = scalar_lea.sflag [#allocation3], %s1121_s20 }
 0x3e5   : > { %p1521_p8 = pnand %p1527_p7, %p1781_p6 }
 0x3e7   : > { %1642 = dma.done.wait (!%p1521_p8), %s1122_s25, 512  }
 0x3e8   : > { %1644 = vsyncadd (!%p1521_p8), %s1122_s25, 4294966784  ;;  %s1131_s28 = scalar_lea.sflag [#allocation5], %s1121_s20 }
 0x3e9   : > { %1646 = dma.done.wait (!%p1521_p8), %s1131_s28, 128  }
 0x3ea   : > { %1648 = vsyncadd (!%p1521_p8), %s1131_s28, 4294967168  ;;  %p26_p5 = scmp.ge.s32.totalorder %s1764_s27, 5   ;;  %s2098_s21 = smov %s1655_s22 }
 0x3eb   : > { %s2099_s22 = smov %s1659_s23  ;;  %s2100_s23 = smov %s1775_s30 }
 0x3ec   : > { %s2101_s24 = smov %s1764_s27  ;;  %28 = sbr.rel (!%p26_p5) target bundleno = 9 (0x9), region = 119 }
 0x3f3   :  { %1136 = vsyncpa [#allocation3], 1 }
 0x3f4   :  { %1138 = vsyncpa [#allocation3 + $0x1], 1 }
 0x3f5   :  { %1139 = vsyncpa [#allocation5], 1 }
 0x3f6   :  { %1141 = vsyncpa [#allocation5 + $0x1], 1 }

</bundles_post_ra>
